<compile_context>
chip_gen: v7x
topology: tpu7x:2x2x1
jax: 0.10.0
libtpu: 0.0.40
codegen_flags: <defaults>
</compile_context>

<pallas_src>
import jax
import jax.numpy as jnp
from jax.experimental import pallas as pl
from jax.experimental.pallas import tpu as pltpu

HIDDEN = 256
MIN_TILE_B = 128    # lane width (hardware lane count)
MAX_TILE_B = 1024   # [H, TB] f32 hidden scratch = 1 MiB at 1024 — tiny vs VMEM


def _round_up(n, m):
    return ((n + m - 1) // m) * m


def _choose_tile_b(batch):
    """Lane-dense batch tile: multiple of 128, capped at MAX_TILE_B, and sized so
    the grid has >= 2 tiles whenever the batch spans more than one lane tile
    (lets dimension_semantics=("parallel",) shard across v7x's two TensorCores)."""
    b128 = _round_up(batch, MIN_TILE_B)
    if b128 <= MIN_TILE_B:
        return MIN_TILE_B
    half = _round_up(-(-b128 // 2), MIN_TILE_B)   # ceil(b128 / 2), rounded to 128
    return max(MIN_TILE_B, min(half, MAX_TILE_B))


def critic_kernel(x_ref, wb_ref, w2_ref, b2_ref, o_ref):
    # x_ref : [1, TB]   batch on the 128-lane axis
    # wb_ref: [H, 2]    column 0 = w1, column 1 = b1 (single resident buffer)
    # w2_ref: [1, H]    lane-dense row so layer 2 runs on the MXU
    # b2_ref: [1, 1]    scalar in SMEM
    # o_ref : [1, TB]
    xl = jnp.log(x_ref[...])                                   # [1, TB]  (EUP)
    wb = wb_ref[...]
    w1 = wb[:, 0:1]                                            # [H, 1]
    b1 = wb[:, 1:2]                                            # [H, 1]
    # Layer 1: Linear(1, H) is a K=1 outer product -> VPU broadcast multiply.
    h = jnp.maximum(w1 * xl + b1, 0.0)                         # [H, TB]  (VPU)
    # Layer 2: Linear(H, 1) as a [1,H] x [H,TB] matmul -> idle MXU slot,
    # f32 accumulation.
    y = jnp.dot(w2_ref[...], h, preferred_element_type=jnp.float32)  # [1, TB]
    o_ref[...] = y + b2_ref[0, 0]                              # scalar broadcast


def critic_forward(x, w1, b1, w2, b2):
    """x: [B,1]  w1: [1,H]  b1: [1,H]  w2: [H,1]  b2: [1,1]  ->  [B,1]."""
    B = x.shape[0]
    tile_b = _choose_tile_b(B)
    n_tiles = pl.cdiv(B, tile_b)
    Bp = n_tiles * tile_b

    # Lane-dense input: batch on the 128-lane axis.
    xt = x.reshape(1, B)
    if Bp != B:
        # Pad with 1.0 (log(1) = 0) so padded lanes stay finite; sliced off below.
        xt = jnp.pad(xt, ((0, 0), (0, Bp - B)), constant_values=1.0)

    # Pack w1/b1 into one [H, 2] resident buffer; w2 as a lane-dense [1, H] row.
    wb = jnp.concatenate([w1.reshape(HIDDEN, 1), b1.reshape(HIDDEN, 1)], axis=1)
    w2_row = w2.reshape(1, HIDDEN)

    out = pl.pallas_call(
        critic_kernel,
        out_shape=jax.ShapeDtypeStruct((1, Bp), jnp.float32),
        grid=(n_tiles,),
        in_specs=[
            pl.BlockSpec((1, tile_b), lambda i: (0, i)),        # x tile (lane-dense)
            pl.BlockSpec((HIDDEN, 2), lambda i: (0, 0)),         # packed w1|b1 (resident)
            pl.BlockSpec((1, HIDDEN), lambda i: (0, 0)),         # w2 row (resident)
            pl.BlockSpec(memory_space=pltpu.MemorySpace.SMEM),   # b2 scalar
        ],
        out_specs=pl.BlockSpec((1, tile_b), lambda i: (0, i)),
        compiler_params=pltpu.CompilerParams(
            dimension_semantics=("parallel",),   # batch tiles shard across TCs (v7x)
            vmem_limit_bytes=32 << 20,           # ample: ~1 MiB hidden + tiny tiles
        ),
    )(xt, wb, w2_row, b2)

    return out[:, :B].reshape(B, 1)


def init_params(key):
    """Deterministic init mimicking nn.Linear default (uniform +/- 1/sqrt(fan_in))."""
    k1, k2, k3, k4 = jax.random.split(key, 4)
    bound1 = 1.0 / jnp.sqrt(1.0)     # fan_in = 1
    bound2 = 1.0 / jnp.sqrt(256.0)   # fan_in = 256
    w1 = jax.random.uniform(k1, (1, HIDDEN), jnp.float32, -bound1, bound1)
    b1 = jax.random.uniform(k2, (1, HIDDEN), jnp.float32, -bound1, bound1)
    w2 = jax.random.uniform(k3, (HIDDEN, 1), jnp.float32, -bound2, bound2)
    b2 = jax.random.uniform(k4, (1, 1), jnp.float32, -bound2, bound2)
    return w1, b1, w2, b2


def reference_forward(x, w1, b1, w2, b2):
    xl = jnp.log(x)  # no guard for x <= 0, matching torch.log semantics
    h = jnp.maximum(xl @ w1 + b1, 0.0)
    return h @ w2 + b2


if __name__ == "__main__":
    key = jax.random.PRNGKey(0)
    k_x, k_x2, k_p = jax.random.split(key, 3)
    w1, b1, w2, b2 = init_params(k_p)

    # Small batch (single lane tile, exercises the padding path).
    B = 8
    x = jax.random.uniform(k_x, (B, 1), jnp.float32, 0.1, 2.0)  # inputs > 0 for log
    out = jax.block_until_ready(critic_forward(x, w1, b1, w2, b2))
    ref = reference_forward(x, w1, b1, w2, b2)
    assert out.shape == (B, 1)
    assert jnp.allclose(out, ref, atol=1e-5, rtol=1e-4), (out, ref)

    # Larger batch (exercises the >=2-tile grid for megacore + padding).
    B2 = 300
    x2 = jax.random.uniform(k_x2, (B2, 1), jnp.float32, 0.1, 2.0)
    out2 = jax.block_until_ready(critic_forward(x2, w1, b1, w2, b2))
    ref2 = reference_forward(x2, w1, b1, w2, b2)
    assert out2.shape == (B2, 1)
    assert jnp.allclose(out2, ref2, atol=1e-5, rtol=1e-4), (out2, ref2)

    print("KERNEL_OK")
</pallas_src>

<mosaic_0001>
module attributes {stable_mosaic.version = 11 : i64} {
  func.func @critic_kernel(%arg0: i32, %arg1: memref<1x128xf32, #tpu.memory_space<vmem>>, %arg2: memref<256x2xf32, #tpu.memory_space<vmem>>, %arg3: memref<1x256xf32, #tpu.memory_space<vmem>>, %arg4: memref<1x1xf32, #tpu.memory_space<smem>>, %arg5: memref<1x128xf32, #tpu.memory_space<vmem>>) attributes {dimension_semantics = [#tpu.dimension_semantics<parallel>], iteration_bounds = array<i64: 1>, scalar_prefetch = 0 : i64, scratch_operands = 0 : i64, tpu.core_type = #tpu.core_type<tc>, window_params = [{transform_indices = @transform_0, window_bounds = array<i64: 1, 128>}, {pipeline_mode = #tpu.pipeline_mode<synchronous>, transform_indices = @transform_1, window_bounds = array<i64: 256, 2>}, {pipeline_mode = #tpu.pipeline_mode<synchronous>, transform_indices = @transform_2, window_bounds = array<i64: 1, 256>}, {transform_indices = @transform_3, window_bounds = array<i64: 1, 1>}, {transform_indices = @transform_4, window_bounds = array<i64: 1, 128>}]} {
    %c0 = arith.constant 0 : index
    %c0_0 = arith.constant 0 : index
    %0 = vector.load %arg1[%c0, %c0_0] : memref<1x128xf32, #tpu.memory_space<vmem>>, vector<1x128xf32>
    %1 = math.log %0 : vector<1x128xf32>
    %c0_1 = arith.constant 0 : index
    %c0_2 = arith.constant 0 : index
    %2 = vector.load %arg2[%c0_1, %c0_2] : memref<256x2xf32, #tpu.memory_space<vmem>>, vector<256x2xf32>
    %3 = vector.extract_strided_slice %2 {offsets = [0, 0], sizes = [256, 1], strides = [1, 1]} : vector<256x2xf32> to vector<256x1xf32>
    %4 = vector.extract_strided_slice %2 {offsets = [0, 1], sizes = [256, 1], strides = [1, 1]} : vector<256x2xf32> to vector<256x1xf32>
    %5 = vector.broadcast %3 : vector<256x1xf32> to vector<256x128xf32>
    %6 = vector.broadcast %1 : vector<1x128xf32> to vector<256x128xf32>
    %7 = arith.mulf %5, %6 : vector<256x128xf32>
    %8 = vector.broadcast %4 : vector<256x1xf32> to vector<256x128xf32>
    %9 = arith.addf %7, %8 : vector<256x128xf32>
    %cst = arith.constant 0.000000e+00 : f32
    %10 = vector.broadcast %cst : f32 to vector<256x128xf32>
    %11 = arith.maximumf %9, %10 : vector<256x128xf32>
    %c0_3 = arith.constant 0 : index
    %c0_4 = arith.constant 0 : index
    %12 = vector.load %arg3[%c0_3, %c0_4] : memref<1x256xf32, #tpu.memory_space<vmem>>, vector<1x256xf32>
    %cst_5 = arith.constant dense<0.000000e+00> : vector<1x128xf32>
    %13 = tpu.matmul %12, %11, %cst_5 {dimension_numbers = #tpu.dot_dimension_numbers<[1], [0], [0], [1], [0, 0, 1, 1], [], []>} : vector<1x256xf32>, vector<256x128xf32>, vector<1x128xf32> -> vector<1x128xf32>
    %c0_6 = arith.constant 0 : index
    %c0_7 = arith.constant 0 : index
    %14 = memref.load %arg4[%c0_6, %c0_7] : memref<1x1xf32, #tpu.memory_space<smem>>
    %15 = vector.broadcast %14 : f32 to vector<1x128xf32>
    %16 = arith.addf %13, %15 : vector<1x128xf32>
    %c0_8 = arith.constant 0 : index
    %c0_9 = arith.constant 0 : index
    %17 = vector.load %arg5[%c0_8, %c0_9] : memref<1x128xf32, #tpu.memory_space<vmem>>, vector<1x128xf32>
    tpu.vector_store %arg5[%c0_8, %c0_9], %16 {strides = array<i32>} : memref<1x128xf32, #tpu.memory_space<vmem>>, vector<1x128xf32>,
    return
  }
  func.func @transform_0(%arg0: i32) -> (i32, i32) {
    %c0_i32 = arith.constant 0 : i32
    %c0_i32_0 = arith.constant 0 : i32
    return %c0_i32, %arg0 : i32, i32
  }
  func.func @transform_1(%arg0: i32) -> (i32, i32) {
    %c0_i32 = arith.constant 0 : i32
    %c0_i32_0 = arith.constant 0 : i32
    %c0_i32_1 = arith.constant 0 : i32
    return %c0_i32, %c0_i32_0 : i32, i32
  }
  func.func @transform_2(%arg0: i32) -> (i32, i32) {
    %c0_i32 = arith.constant 0 : i32
    %c0_i32_0 = arith.constant 0 : i32
    %c0_i32_1 = arith.constant 0 : i32
    return %c0_i32, %c0_i32_0 : i32, i32
  }
  func.func @transform_3(%arg0: i32) -> (i32, i32) {
    %c0_i32 = arith.constant 0 : i32
    %c0_i32_0 = arith.constant 0 : i32
    %c0_i32_1 = arith.constant 0 : i32
    return %c0_i32, %c0_i32_0 : i32, i32
  }
  func.func @transform_4(%arg0: i32) -> (i32, i32) {
    %c0_i32 = arith.constant 0 : i32
    %c0_i32_0 = arith.constant 0 : i32
    return %c0_i32, %arg0 : i32, i32
  }
}

</mosaic_0001>

<bundles_post_ra>
// kernel: tpu_custom_call.1
= control target key start
LH: loop header
LB: loop body
LE: loop exit
PB: predicated region body
PF: predicated region fallthrough
CT: control target
= control target key end

     0   :  { %v657_v2 = vmov 0   ;;  %v658_v6 = vmov 1   ;;  %s900_s0 = inlined_call_operand.vmem [shape: f32[1,128], index: 0, kind: input, shape index: {}]   ;;  %s901_s1 = inlined_call_operand.vmem [shape: f32[256,2], index: 1, kind: input, shape index: {}]   ;;  %s902_s2 = inlined_call_operand.vmem [shape: f32[1,256], index: 2, kind: input, shape index: {}]   ;;  %s903_s3 = inlined_call_operand.<no memory space> [shape: f32[1,1], index: 3, kind: input, shape index: {}]   ;;  %s904_s4 = inlined_call_operand.hbm [shape: f32[1,128], index: 4, kind: output, shape index: {}]  }
   0x1   :  { %v38_v0 = vld [vmem:[%s901_s1 + $0x80] sm:$0xff]  ;;  %614 = vset.pattern.permute.xlu1 %v657_v2  ;;  %613 = vset.pattern.permute.xlu0 %v657_v2  ;;  %v39_v3 = vld [vmem:[%s901_s1 + $0x88] sm:$0xff]  ;;  %v41_v5 = vld [vmem:[%s901_s1 + $0x98] sm:$0xff] }
   0x2   :  { %v22_v1 = vld [vmem:[%s901_s1] sm:$0xff]  ;;  %136 = vperm.xlu0 %613, %v38_v0   ;;  %v23_v4 = vld [vmem:[%s901_s1 + $0x8] sm:$0xff] }
   0x3   :  { %56 = vperm.xlu1 %614, %v22_v1  }
   0x6   :  { %141 = vperm.xlu0 %613, %v39_v3  }
   0x7   :  { %61 = vperm.xlu1 %614, %v23_v4  }
   0xa   :  { %151 = vperm.xlu0 %613, %v41_v5  }
   0xb   :  { %615 = vset.pattern.permute.xlu1 %v658_v6 }
   0xc   :  { %10 = vsyncpa [#allocation4], 0  ;;  %321 = vperm.xlu1 %615, %v39_v3   ;;  %v43_v7 = vld [vmem:[%s901_s1 + $0xa8] sm:$0xff]  ;;  %v45_v8 = vld [vmem:[%s901_s1 + $0xb8] sm:$0xff]  ;;  %v215_v43 = vlaneseq  ;;  %s659_s30 = smov [#allocation3]  }
   0xd   :  { %v40_v9 = vld [vmem:[%s901_s1 + $0x90] sm:$0xff]  ;;  %v716_v10 = vld [vmem:[%s901_s1 + $0xc8] sm:$0xff]  ;;  %v725_v12 = vld [vmem:[%s901_s1 + $0xd8] sm:$0xff]  ;;  %s535_s5 = sshll.u32 %s659_s30, 4  ;;  %s536_s5 = int_to_ptr.vmem [resolvable:$true] %s535_s5 }
   0xe   :  { %161 = vperm.xlu0 %613, %v43_v7   ;;  %v24_v11 = vld [vmem:[%s901_s1 + $0x10] sm:$0xff]  ;;  %v25_v13 = vld [vmem:[%s901_s1 + $0x18] sm:$0xff]  ;;  %v734_v14 = vld [vmem:[%s901_s1 + $0xe8] sm:$0xff]  ;;  %v818_v46 = vshrl.u32 %v215_v43, 7  ;;  %s633_s6 = scalar_lea.vmem %s536_s5, 16  ;;  %s637_s7 = scalar_lea.vmem %s536_s5, 32 }
   0xf   :  { %v740_v15 = vld [vmem:[%s901_s1 + $0xf8] sm:$0xff]  ;;  %v42_v16 = vld [vmem:[%s901_s1 + $0xa0] sm:$0xff]  ;;  %v27_v18 = vld [vmem:[%s901_s1 + $0x28] sm:$0xff]  ;;  %p634_p0 = scmp.ne.s32.totalorder %s536_s5, %s633_s6  ;;  %p638_p1 = scmp.lt.s32.totalorder %s536_s5, %s536_s5 }
  0x10   :  { %253 = vperm.xlu1 %615, %v22_v1   ;;  %v26_v17 = vld [vmem:[%s901_s1 + $0x20] sm:$0xff]  ;;  %v44_v19 = vld [vmem:[%s901_s1 + $0xb0] sm:$0xff]  ;;  %v29_v21 = vld [vmem:[%s901_s1 + $0x38] sm:$0xff]  ;;  %v217_v51 = vsub.s32 0, %v818_v46  ;;  %p639_p2 = scmp.lt.s32.totalorder %s637_s7, %s633_s6 }
  0x11   :  { %v28_v20 = vld [vmem:[%s901_s1 + $0x30] sm:$0xff]  ;;  %v46_v22 = vld [vmem:[%s901_s1 + $0xc0] sm:$0xff]  ;;  %v31_v23 = vld [vmem:[%s901_s1 + $0x48] sm:$0xff] }
  0x12   :  { %171 = vperm.xlu0 %613, %v45_v8   ;;  %v48_v24 = vld [vmem:[%s901_s1 + $0xd0] sm:$0xff]  ;;  %v33_v25 = vld [vmem:[%s901_s1 + $0x58] sm:$0xff]  ;;  %v50_v26 = vld [vmem:[%s901_s1 + $0xe0] sm:$0xff]  ;;  %p640_p3 = por %p639_p2, %p638_p1 }
  0x13   :  { %v30_v27 = vld [vmem:[%s901_s1 + $0x40] sm:$0xff]  ;;  %v35_v28 = vld [vmem:[%s901_s1 + $0x68] sm:$0xff]  ;;  %v52_v29 = vld [vmem:[%s901_s1 + $0xf0] sm:$0xff] }
  0x14   :  { %616 = vset.pattern.permute.xlu1 %v657_v2  ;;  %v37_v30 = vld [vmem:[%s901_s1 + $0x78] sm:$0xff]  ;;  %v32_v31 = vld [vmem:[%s901_s1 + $0x50] sm:$0xff]  ;;  %v34_v34 = vld [vmem:[%s901_s1 + $0x60] sm:$0xff]  ;;  %p641_p4 = pnand %p640_p3, %p634_p0 }
  0x15   :  { %146 = vperm.xlu1 %616, %v40_v9   ;;  %v19_v39 = vld [vmem:[%s900_s0] sm:$0x1]  ;;  %v36_v50 = vld [vmem:[%s901_s1 + $0x70] sm:$0xff] }
  0x16   :  { %181 = vperm.xlu0 %613, %v716_v10   ;;  %631 = vlog2.f32 %v19_v39 }
  0x19   :  { %66 = vperm.xlu1 %616, %v24_v11  }
  0x1a   :  { %191 = vperm.xlu0 %613, %v725_v12  }
  0x1d   :  { %71 = vperm.xlu1 %616, %v25_v13  }
  0x1e   :  { %201 = vperm.xlu0 %613, %v734_v14  }
  0x20   :  { %v632_v48 = vpop.eup %631 }
  0x21   :  { %617 = vset.pattern.permute.xlu1 %v658_v6  ;;  %v21_v52 = vmul.f32 0.6931472, %v632_v48 }
  0x22   :  { %329 = vperm.xlu1 %617, %v41_v5   ;;  %211 = vperm.xlu0 %613, %v740_v15  }
  0x23   :  { %v831_v55 = vrot.slane %v21_v52, %v217_v51 }
  0x26   :  { %261 = vperm.xlu1 %617, %v24_v11   ;;  %629 = vset.pattern.permute.xlu0 %v658_v6 }
  0x27   :  { %317 = vperm.xlu0 %629, %v38_v0  }
  0x2a   :  { %618 = vset.pattern.permute.xlu1 %v657_v2 }
  0x2b   :  { %156 = vperm.xlu1 %618, %v42_v16   ;;  %257 = vperm.xlu0 %629, %v23_v4  }
  0x2f   :  { %76 = vperm.xlu1 %618, %v26_v17   ;;  %325 = vperm.xlu0 %629, %v40_v9  }
  0x33   :  { %81 = vperm.xlu1 %618, %v27_v18   ;;  %265 = vperm.xlu0 %629, %v25_v13  }
  0x37   :  { %619 = vset.pattern.permute.xlu1 %v658_v6  ;;  %333 = vperm.xlu0 %629, %v42_v16  }
  0x38   :  { %337 = vperm.xlu1 %619, %v43_v7  }
  0x3b   :  { %273 = vperm.xlu0 %629, %v27_v18  }
  0x3c   :  { %269 = vperm.xlu1 %619, %v26_v17   ;;  %v847_v17 = vld [vmem:[%s902_s2] sm:$0x3] }
  0x3f   :  { %341 = vperm.xlu0 %629, %v44_v19  }
  0x40   :  { %620 = vset.pattern.permute.xlu1 %v657_v2 }
  0x41   :  { %166 = vperm.xlu1 %620, %v44_v19  }
  0x43   :  { %281 = vperm.xlu0 %629, %v29_v21  }
  0x45   :  { %86 = vperm.xlu1 %620, %v28_v20  }
  0x47   :  { %349 = vperm.xlu0 %629, %v46_v22  }
  0x49   :  { %91 = vperm.xlu1 %620, %v29_v21  }
  0x4b   :  { %289 = vperm.xlu0 %629, %v31_v23  }
  0x4d   :  { %621 = vset.pattern.permute.xlu1 %v658_v6 }
  0x4e   :  { %345 = vperm.xlu1 %621, %v45_v8  }
  0x4f   :  { %357 = vperm.xlu0 %629, %v48_v24  }
  0x52   :  { %277 = vperm.xlu1 %621, %v28_v20  }
  0x53   :  { %297 = vperm.xlu0 %629, %v33_v25  }
  0x56   :  { %622 = vset.pattern.permute.xlu1 %v657_v2 }
  0x57   :  { %176 = vperm.xlu1 %622, %v46_v22   ;;  %365 = vperm.xlu0 %629, %v50_v26  }
  0x5b   :  { %96 = vperm.xlu1 %622, %v30_v27   ;;  %305 = vperm.xlu0 %629, %v35_v28  }
  0x5f   :  { %101 = vperm.xlu1 %622, %v31_v23   ;;  %373 = vperm.xlu0 %629, %v52_v29  }
  0x63   :  { %623 = vset.pattern.permute.xlu1 %v658_v6  ;;  %313 = vperm.xlu0 %629, %v37_v30  }
  0x64   :  { %353 = vperm.xlu1 %623, %v716_v10  }
  0x68   :  { %285 = vperm.xlu1 %623, %v30_v27  }
  0x6c   :  { %624 = vset.pattern.permute.xlu1 %v657_v2 }
  0x6d   :  { %186 = vperm.xlu1 %624, %v48_v24  }
  0x71   :  { %106 = vperm.xlu1 %624, %v32_v31  }
  0x75   :  { %111 = vperm.xlu1 %624, %v33_v25  }
  0x79   :  { %625 = vset.pattern.permute.xlu1 %v658_v6 }
  0x7a   :  { %361 = vperm.xlu1 %625, %v725_v12  }
  0x7e   :  { %293 = vperm.xlu1 %625, %v32_v31  }
  0x81   :  { %v137_v33 = vpop.permute.xlu0 %136 }
  0x82   :  { %626 = vset.pattern.permute.xlu1 %v657_v2  ;;  %v57_v32 = vpop.permute.xlu1 %56  ;;  %v236_v59 = vmul.f32 %v831_v55, %v137_v33 }
  0x83   :  { %196 = vperm.xlu1 %626, %v50_v26   ;;  %v220_v62 = vmul.f32 %v831_v55, %v57_v32 }
  0x85   :  { %v142_v36 = vpop.permute.xlu0 %141 }
  0x86   :  { %v62_v35 = vpop.permute.xlu1 %61  ;;  %v237_v57 = vmul.f32 %v831_v55, %v142_v36 }
  0x87   :  { %116 = vperm.xlu1 %626, %v34_v34  }
  0x89   :  { %v152_v37 = vpop.permute.xlu0 %151 }
  0x8a   :  { %v239_v3 = vmul.f32 %v831_v55, %v152_v37 }
  0x8b   :  { %121 = vperm.xlu1 %626, %v35_v28   ;;  %v322_v38 = vpop.permute.xlu1 %321 }
  0x8c   :  { %v397_v61 = vadd.f32 %v322_v38, %v237_v57 }
  0x8d   :  { %v810_v40 = vpop.permute.xlu0 %161 }
  0x8e   :  { %v429_v4 = vmax.f32 %v397_v61, 0.0  ;;  %v241_v28 = vmul.f32 %v831_v55, %v810_v40 }
  0x8f   :  { %627 = vset.pattern.permute.xlu1 %v658_v6  ;;  %v254_v41 = vpop.permute.xlu1 %253 }
  0x90   :  { %369 = vperm.xlu1 %627, %v734_v14   ;;  %v380_v1 = vadd.f32 %v254_v41, %v220_v62 }
  0x91   :  { %v814_v42 = vpop.permute.xlu0 %171 }
  0x92   :  { %v412_v10 = vmax.f32 %v380_v1, 0.0 }
  0x94   :  { %301 = vperm.xlu1 %627, %v34_v34   ;;  %v147_v44 = vpop.permute.xlu1 %146 }
  0x95   :  { %v816_v45 = vpop.permute.xlu0 %181  ;;  %v238_v11 = vmul.f32 %v831_v55, %v147_v44 }
  0x98   :  { %628 = vset.pattern.permute.xlu1 %v657_v2  ;;  %v67_v47 = vpop.permute.xlu1 %66  ;;  %v221_v2 = vmul.f32 %v831_v55, %v62_v35 }
  0x99   :  { %206 = vperm.xlu1 %628, %v52_v29   ;;  %v821_v49 = vpop.permute.xlu0 %191  ;;  %v222_v18 = vmul.f32 %v831_v55, %v67_v47 }
  0x9c   :  { %v72_v53 = vpop.permute.xlu1 %71 }
  0x9d   :  { %126 = vperm.xlu1 %628, %v36_v50   ;;  %v827_v54 = vpop.permute.xlu0 %201  ;;  %v223_v22 = vmul.f32 %v831_v55, %v72_v53 }
  0xa1   :  { %131 = vperm.xlu1 %628, %v37_v30   ;;  %v330_v56 = vpop.permute.xlu1 %329  ;;  %v834_v58 = vpop.permute.xlu0 %211 }
  0xa2   :  { %v399_v12 = vadd.f32 %v330_v56, %v239_v3 }
  0xa4   :  { %v431_v23 = vmax.f32 %v399_v12, 0.0 }
  0xa5   :  { %630 = vset.pattern.permute.xlu1 %v658_v6  ;;  %v262_v60 = vpop.permute.xlu1 %261 }
  0xa6   :  { %377 = vperm.xlu1 %630, %v740_v15   ;;  %v318_v63 = vpop.permute.xlu0 %317  ;;  %v454_v15 = vsub.s32 1, %v818_v46  ;;  %v382_v24 = vadd.f32 %v262_v60, %v222_v18 }
  0xa7   :  { %v396_v0 = vadd.f32 %v318_v63, %v236_v59 }
  0xa8   :  { %v455_v21 = vrot.slane %v847_v17, %v454_v15  ;;  %v414_v31 = vmax.f32 %v382_v24, 0.0 }
  0xa9   :  { %v428_v5 = vmax.f32 %v396_v0, 0.0  ;;  %v243_v0 = vmul.f32 %v831_v55, %v814_v42 }
  0xaa   :  { %309 = vperm.xlu1 %630, %v36_v50   ;;  %v157_v7 = vpop.permute.xlu1 %156  ;;  %v258_v8 = vpop.permute.xlu0 %257  ;;  %522 = vmatprep.mubr.f32.mxu0 %v455_v21  ;;  %v245_v21 = vmul.f32 %v831_v55, %v816_v45 }
  0xab   :  { %v381_v9 = vadd.f32 %v258_v8, %v221_v2  ;;  %v578_v6 = vpack.c.bf16 %v429_v4, %v428_v5  ;;  %v240_v32 = vmul.f32 %v831_v55, %v157_v7 }
  0xad   :  { %v413_v13 = vmax.f32 %v381_v9, 0.0  ;;  %579 = vmatprep.subr.bf16.mxu0 %v578_v6 }
  0xae   :  { %v77_v14 = vpop.permute.xlu1 %76  ;;  %v326_v16 = vpop.permute.xlu0 %325 }
  0xaf   :  { %v398_v19 = vadd.f32 %v326_v16, %v238_v11  ;;  %v580_v20 = vpack.c.bf16 %v413_v13, %v412_v10  ;;  %v224_v39 = vmul.f32 %v831_v55, %v77_v14 }
  0xb1   :  { %v430_v25 = vmax.f32 %v398_v19, 0.0  ;;  %581 = vmatpush3.bf16.msra.mxu0 %v580_v20 }
  0xb2   :  { %v82_v26 = vpop.permute.xlu1 %81  ;;  %v266_v27 = vpop.permute.xlu0 %265 }
  0xb3   :  { %v582_v29 = vpack.c.bf16 %v431_v23, %v430_v25  ;;  %v383_v30 = vadd.f32 %v266_v27, %v223_v22  ;;  %v225_v41 = vmul.f32 %v831_v55, %v82_v26 }
  0xb5   :  { %v415_v33 = vmax.f32 %v383_v30, 0.0  ;;  %583 = vmatprep.subr.bf16.mxu0 %v582_v29 }
  0xb6   :  { %v334_v34 = vpop.permute.xlu0 %333 }
  0xb7   :  { %v338_v35 = vpop.permute.xlu1 %337  ;;  %v584_v36 = vpack.c.bf16 %v415_v33, %v414_v31  ;;  %v400_v37 = vadd.f32 %v334_v34, %v240_v32 }
  0xb8   :  { %v401_v38 = vadd.f32 %v338_v35, %v241_v28 }
  0xb9   :  { %v432_v43 = vmax.f32 %v400_v37, 0.0  ;;  %585 = vmatpush3.bf16.msra.mxu0 %v584_v36 }
  0xba   :  { %v433_v44 = vmax.f32 %v401_v38, 0.0  ;;  %v274_v40 = vpop.permute.xlu0 %273 }
  0xbb   :  { %v270_v47 = vpop.permute.xlu1 %269  ;;  %v385_v50 = vadd.f32 %v274_v40, %v225_v41 }
  0xbc   :  { %v586_v48 = vpack.c.bf16 %v433_v44, %v432_v43  ;;  %v384_v52 = vadd.f32 %v270_v47, %v224_v39  ;;  %v247_v43 = vmul.f32 %v831_v55, %v821_v49 }
  0xbd   :  { %v417_v53 = vmax.f32 %v385_v50, 0.0 }
  0xbe   :  { %v416_v56 = vmax.f32 %v384_v52, 0.0  ;;  %587 = vmatprep.subr.bf16.mxu0 %v586_v48  ;;  %v342_v63 = vpop.permute.xlu0 %341 }
  0xc0   :  { %v588_v57 = vpack.c.bf16 %v417_v53, %v416_v56  ;;  %v167_v59 = vpop.permute.xlu1 %166 }
  0xc1   :  { %v242_v61 = vmul.f32 %v831_v55, %v167_v59 }
  0xc2   :  { %589 = vmatpush3.bf16.msra.mxu0 %v588_v57  ;;  %v282_v3 = vpop.permute.xlu0 %281 }
  0xc3   :  { %v402_v1 = vadd.f32 %v342_v63, %v242_v61 }
  0xc4   :  { %v87_v60 = vpop.permute.xlu1 %86 }
  0xc5   :  { %v434_v7 = vmax.f32 %v402_v1, 0.0  ;;  %v226_v8 = vmul.f32 %v831_v55, %v87_v60 }
  0xc6   :  { %v350_v20 = vpop.permute.xlu0 %349 }
  0xc8   :  { %v92_v62 = vpop.permute.xlu1 %91 }
  0xc9   :  { %v227_v2 = vmul.f32 %v831_v55, %v92_v62 }
  0xca   :  { %v290_v26 = vpop.permute.xlu0 %289 }
  0xcb   :  { %v387_v9 = vadd.f32 %v282_v3, %v227_v2 }
  0xcd   :  { %v346_v4 = vpop.permute.xlu1 %345  ;;  %v419_v13 = vmax.f32 %v387_v9, 0.0 }
  0xce   :  { %v403_v5 = vadd.f32 %v346_v4, %v243_v0  ;;  %v358_v41 = vpop.permute.xlu0 %357 }
  0xd0   :  { %v435_v6 = vmax.f32 %v403_v5, 0.0  ;;  %v249_v5 = vmul.f32 %v831_v55, %v827_v54 }
  0xd1   :  { %v278_v10 = vpop.permute.xlu1 %277 }
  0xd2   :  { %v590_v11 = vpack.c.bf16 %v435_v6, %v434_v7  ;;  %v386_v12 = vadd.f32 %v278_v10, %v226_v8  ;;  %v298_v50 = vpop.permute.xlu0 %297 }
  0xd4   :  { %v418_v14 = vmax.f32 %v386_v12, 0.0  ;;  %591 = vmatprep.subr.bf16.mxu0 %v590_v11 }
  0xd6   :  { %v592_v15 = vpack.c.bf16 %v419_v13, %v418_v14  ;;  %v177_v16 = vpop.permute.xlu1 %176  ;;  %v366_v4 = vpop.permute.xlu0 %365 }
  0xd7   :  { %v244_v18 = vmul.f32 %v831_v55, %v177_v16 }
  0xd8   :  { %593 = vmatpush3.bf16.msra.mxu0 %v592_v15 }
  0xd9   :  { %v404_v22 = vadd.f32 %v350_v20, %v244_v18 }
  0xda   :  { %v97_v42 = vpop.permute.xlu1 %96  ;;  %v306_v10 = vpop.permute.xlu0 %305 }
  0xdb   :  { %v436_v27 = vmax.f32 %v404_v22, 0.0  ;;  %v228_v28 = vmul.f32 %v831_v55, %v97_v42 }
  0xde   :  { %v102_v19 = vpop.permute.xlu1 %101 }
  0xdf   :  { %v229_v23 = vmul.f32 %v831_v55, %v102_v19 }
  0xe1   :  { %v389_v29 = vadd.f32 %v290_v26, %v229_v23 }
  0xe3   :  { %v354_v24 = vpop.permute.xlu1 %353  ;;  %v421_v34 = vmax.f32 %v389_v29, 0.0 }
  0xe4   :  { %v405_v25 = vadd.f32 %v354_v24, %v245_v21  ;;  %v374_v24 = vpop.permute.xlu0 %373 }
  0xe6   :  { %v437_v30 = vmax.f32 %v405_v25, 0.0  ;;  %v251_v25 = vmul.f32 %v831_v55, %v834_v58  ;;  %v451_v58 = vrot.slane %v847_v17, %v217_v51 }
  0xe7   :  { %v286_v31 = vpop.permute.xlu1 %285 }
  0xe8   :  { %v594_v32 = vpack.c.bf16 %v437_v30, %v436_v27  ;;  %v388_v33 = vadd.f32 %v286_v31, %v228_v28  ;;  %v314_v30 = vpop.permute.xlu0 %313 }
  0xea   :  { %v420_v35 = vmax.f32 %v388_v33, 0.0  ;;  %595 = vmatprep.subr.bf16.mxu0 %v594_v32 }
  0xec   :  { %v596_v36 = vpack.c.bf16 %v421_v34, %v420_v35  ;;  %v187_v37 = vpop.permute.xlu1 %186 }
  0xed   :  { %v246_v38 = vmul.f32 %v831_v55, %v187_v37 }
  0xee   :  { %597 = vmatpush3.bf16.msra.mxu0 %v596_v36 }
  0xef   :  { %v406_v44 = vadd.f32 %v358_v41, %v246_v38 }
  0xf0   :  { %v107_v45 = vpop.permute.xlu1 %106 }
  0xf1   :  { %v438_v52 = vmax.f32 %v406_v44, 0.0  ;;  %v230_v53 = vmul.f32 %v831_v55, %v107_v45 }
  0xf4   :  { %v112_v39 = vpop.permute.xlu1 %111 }
  0xf5   :  { %v231_v40 = vmul.f32 %v831_v55, %v112_v39 }
  0xf7   :  { %v391_v56 = vadd.f32 %v298_v50, %v231_v40 }
  0xf9   :  { %v362_v47 = vpop.permute.xlu1 %361  ;;  %v423_v62 = vmax.f32 %v391_v56, 0.0 }
  0xfa   :  { %v407_v48 = vadd.f32 %v362_v47, %v247_v43 }
  0xfc   :  { %v439_v57 = vmax.f32 %v407_v48, 0.0 }
  0xfd   :  { %v294_v59 = vpop.permute.xlu1 %293 }
  0xfe   :  { %v598_v60 = vpack.c.bf16 %v439_v57, %v438_v52  ;;  %v390_v61 = vadd.f32 %v294_v59, %v230_v53 }
 0x100   :  { %v422_v63 = vmax.f32 %v390_v61, 0.0  ;;  %599 = vmatprep.subr.bf16.mxu0 %v598_v60 }
 0x102   :  { %v600_v0 = vpack.c.bf16 %v423_v62, %v422_v63  ;;  %v197_v1 = vpop.permute.xlu1 %196 }
 0x103   :  { %v248_v2 = vmul.f32 %v831_v55, %v197_v1 }
 0x104   :  { %601 = vmatpush3.bf16.msra.mxu0 %v600_v0 }
 0x105   :  { %v408_v7 = vadd.f32 %v366_v4, %v248_v2 }
 0x106   :  { %v117_v49 = vpop.permute.xlu1 %116 }
 0x107   :  { %v440_v11 = vmax.f32 %v408_v7, 0.0  ;;  %v232_v12 = vmul.f32 %v831_v55, %v117_v49 }
 0x10a   :  { %v122_v3 = vpop.permute.xlu1 %121 }
 0x10b   :  { %v233_v8 = vmul.f32 %v831_v55, %v122_v3 }
 0x10d   :  { %v393_v13 = vadd.f32 %v306_v10, %v233_v8 }
 0x10f   :  { %v370_v9 = vpop.permute.xlu1 %369  ;;  %v425_v18 = vmax.f32 %v393_v13, 0.0 }
 0x110   :  { %v409_v6 = vadd.f32 %v370_v9, %v249_v5 }
 0x112   :  { %v441_v14 = vmax.f32 %v409_v6, 0.0 }
 0x113   :  { %v302_v15 = vpop.permute.xlu1 %301 }
 0x114   :  { %v602_v16 = vpack.c.bf16 %v441_v14, %v440_v11  ;;  %v392_v42 = vadd.f32 %v302_v15, %v232_v12 }
 0x116   :  { %v424_v19 = vmax.f32 %v392_v42, 0.0  ;;  %603 = vmatprep.subr.bf16.mxu0 %v602_v16 }
 0x118   :  { %v604_v20 = vpack.c.bf16 %v425_v18, %v424_v19  ;;  %v207_v21 = vpop.permute.xlu1 %206 }
 0x119   :  { %v250_v22 = vmul.f32 %v831_v55, %v207_v21 }
 0x11a   :  { %605 = vmatpush3.bf16.msra.mxu0 %v604_v20 }
 0x11b   :  { %v410_v26 = vadd.f32 %v374_v24, %v250_v22 }
 0x11c   :  { %v127_v54 = vpop.permute.xlu1 %126 }
 0x11d   :  { %v442_v31 = vmax.f32 %v410_v26, 0.0  ;;  %v234_v32 = vmul.f32 %v831_v55, %v127_v54 }
 0x120   :  { %v132_v23 = vpop.permute.xlu1 %131 }
 0x121   :  { %v235_v27 = vmul.f32 %v831_v55, %v132_v23  ;;  %v446_v55 = vstv %s903_s3 }
 0x123   :  { %v395_v33 = vadd.f32 %v314_v30, %v235_v27 }
 0x125   :  { %v378_v28 = vpop.permute.xlu1 %377  ;;  %v427_v45 = vmax.f32 %v395_v33, 0.0 }
 0x126   :  { %v411_v29 = vadd.f32 %v378_v28, %v251_v25 }
 0x128   :  { %v443_v34 = vmax.f32 %v411_v29, 0.0 }
 0x129   :  { %v310_v35 = vpop.permute.xlu1 %309 }
 0x12a   :  { %v606_v36 = vpack.c.bf16 %v443_v34, %v442_v31  ;;  %v394_v37 = vadd.f32 %v310_v35, %v234_v32 }
 0x12c   :  { %v426_v38 = vmax.f32 %v394_v37, 0.0  ;;  %607 = vmatprep.subr.bf16.mxu0 %v606_v36 }
 0x12e   :  { %v608_v39 = vpack.c.bf16 %v427_v45, %v426_v38 }
 0x130   :  { %609 = vmatpush3.bf16.msra.mxu0 %v608_v39 }
 0x133   :  { %523 = vmatmul.mubr.f32.vlgmr.msra.gmra.mrb[0].mxu0 %v451_v58 }
 0x206   :  { %v575_v41 = vpop.f32.mrb[0].mxu0 }
 0x207   :  { %v576_v43 = vpop.f32.mrb[1].mxu0 }
 0x208   :  { %v577_v44 = vadd.f32 %v576_v43, %v575_v41 }
 0x20a   :  { %v525_v40 = vadd.f32 %v577_v44, %v446_v55 }
 0x20c   :  { %528 = vst [vmem:[#allocation3] sm:$0x1] %v525_v40 }
 0x20d   :  { %644 = shalt.err (!%p641_p4)
}
 0x20e   :  { %s645_s10 = scalar_lea.hbm %s904_s4, 16 }
 0x20f   :  { %p646_p5 = scmp.ne.s32.totalorder %s904_s4, %s645_s10  ;;  %p649_p6 = scmp.lt.u32.totalorder %s645_s10, %s904_s4 }
 0x211   :  { %p651_p7 = pnand %p649_p6, %p646_p5 }
 0x213   :  { %654 = shalt.err (!%p651_p7)
}
 0x214   :  { %538 = dma.vmem_to_hbm [thread:$0]  %s536_s5, 16, %s904_s4, [#allocation4]  }
 0x215   :  { %655 = dma.done.wait [#allocation4], 16  }
 0x216   :  { %656 = vsyncadd [#allocation4], 4294967280 }
 0x217   :  { %542 = vsyncpa [#allocation4], 1 }

</bundles_post_ra>
